<compile_context>
chip_gen: v6e
topology: v6e:2x2x1
jax: 0.10.0
libtpu: 0.0.40
codegen_flags: <defaults>
</compile_context>

<pallas_src>
import functools
import math

import jax
import jax.numpy as jnp
import numpy as np
from jax.experimental import pallas as pl
from jax.experimental.pallas import tpu as pltpu


def _round_up(v, m):
    return ((v + m - 1) // m) * m


# ---------------------------------------------------------------------------
# Generic linear (x @ W + b) Pallas kernel: used for the fused Q|K|V projection
# and the edge-bias projection, both hoisted out of the streaming kernel.
# ---------------------------------------------------------------------------
def _linear_kernel(x_ref, w_ref, b_ref, o_ref):
    o_ref[...] = (jnp.dot(x_ref[...], w_ref[...],
                          preferred_element_type=jnp.float32)
                  + b_ref[...]).astype(o_ref.dtype)


def _pallas_linear(x, w, b, out_dtype):
    # TODO(synk): tile rows for very large N / E; demo shapes fit in one block.
    rows, din = x.shape
    dout = w.shape[1]
    return pl.pallas_call(
        _linear_kernel,
        out_shape=jax.ShapeDtypeStruct((rows, dout), out_dtype),
        grid_spec=pltpu.PrefetchScalarGridSpec(
            num_scalar_prefetch=0,
            grid=(1,),
            in_specs=[
                pl.BlockSpec((rows, din), lambda i: (0, 0)),
                pl.BlockSpec((din, dout), lambda i: (0, 0)),
                pl.BlockSpec((1, dout), lambda i: (0, 0)),
            ],
            out_specs=pl.BlockSpec((rows, dout), lambda i: (0, 0)),
        ),
    )(x, w, b)


# ---------------------------------------------------------------------------
# Streaming sparse-attention kernel (edge blocks, online segment softmax).
# ---------------------------------------------------------------------------
def _graphormer_attn_kernel(
    q_ref, kv_ref,                      # resident bf16 node tensors [Np, HDp] / [Np, 2*HDp]
    eb_ref, src_oh_ref, dst_oh_ref,     # streamed per-edge-block operands
    out_ref,                            # [Np, HDp] f32 resident accumulator (output)
    m_s, l_s,                           # [H, Np] persistent softmax state (head-major)
    *, num_heads, d_pad, inv_sqrt_d, neg_big,
):
    H, Dp = num_heads, d_pad
    HDp = H * Dp
    n_pad = q_ref.shape[0]
    blk = pl.program_id(0)

    @pl.when(blk == 0)
    def _init():
        m_s[...] = jnp.full((H, n_pad), neg_big, dtype=jnp.float32)
        l_s[...] = jnp.zeros((H, n_pad), dtype=jnp.float32)
        out_ref[...] = jnp.zeros_like(out_ref)

    src_oh = src_oh_ref[...]                                  # [te, Np] bf16 (exact 0/1)
    dst_oh = dst_oh_ref[...]                                  # [te, Np] bf16

    # Gathers: native bf16 MXU passes, f32 accumulation.
    kv_src = jnp.dot(src_oh, kv_ref[...], preferred_element_type=jnp.float32)   # [te, 2HDp]
    q_dst = jnp.dot(dst_oh, q_ref[...], preferred_element_type=jnp.float32)     # [te, HDp]
    k_src = kv_src[:, :HDp]
    v_src = kv_src[:, HDp:]

    # Tiny constant head-reduce (S: [HDp,H]) and head-broadcast (B: [H,HDp]) matrices.
    S = (jax.lax.broadcasted_iota(jnp.int32, (HDp, H), 0) // Dp
         == jax.lax.broadcasted_iota(jnp.int32, (HDp, H), 1)).astype(jnp.float32)
    B = (jax.lax.broadcasted_iota(jnp.int32, (H, HDp), 0)
         == jax.lax.broadcasted_iota(jnp.int32, (H, HDp), 1) // Dp).astype(jnp.float32)

    # Per-head <q, k> / sqrt(d) + edge bias  -> [te, H]
    s = (jnp.dot(q_dst * k_src, S, preferred_element_type=jnp.float32) * inv_sqrt_d
         + eb_ref[...])

    # Per-destination-node block max, head-major [H, Np]; mask hoisted out of the head loop.
    mask = dst_oh > 0.0
    blk_max = jnp.concatenate(
        [jnp.max(jnp.where(mask, s[:, h:h + 1], neg_big), axis=0, keepdims=True)
         for h in range(H)], axis=0)                          # [H, Np]
    # Keep the softmax reference point exactly bf16-representable so the per-edge
    # bf16 one-hot gather below reproduces it exactly -> exact online-softmax algebra.
    blk_max = blk_max.astype(jnp.bfloat16).astype(jnp.float32)

    m_prev = m_s[...]
    m_new = jnp.maximum(m_prev, blk_max)                      # [H, Np] (bf16-representable)
    alpha = jnp.exp(m_prev - m_new)                           # [H, Np]

    # Per-edge gather of the new reference max (exact: one-hot and values are bf16-exact).
    m_dst = jax.lax.dot_general(dst_oh, m_new.astype(jnp.bfloat16),
                                (((1,), (1,)), ((), ())),
                                preferred_element_type=jnp.float32)    # [te, H]
    p = jnp.exp(s - m_dst)                                    # [te, H]
    p_bf = p.astype(jnp.bfloat16)

    # Segment-sum of p into nodes, head-major (N lane-dense output).
    blk_sum = jax.lax.dot_general(p_bf, dst_oh, (((0,), (0,)), ((), ())),
                                  preferred_element_type=jnp.float32)  # [H, Np]
    l_s[...] = alpha * l_s[...] + blk_sum
    m_s[...] = m_new

    # Weighted messages + scatter-add (bf16 MXU, f32 accumulate) directly into out_ref.
    p_hd = jnp.dot(p_bf.astype(jnp.float32), B,
                   preferred_element_type=jnp.float32)        # [te, HDp]
    msg = (v_src * p_hd).astype(jnp.bfloat16)                 # [te, HDp]
    scat = jax.lax.dot_general(dst_oh, msg, (((0,), (0,)), ((), ())),
                               preferred_element_type=jnp.float32)      # [Np, HDp]
    alpha_hd = jax.lax.dot_general(alpha, B, (((0,), (0,)), ((), ())),
                                   preferred_element_type=jnp.float32)  # [Np, HDp]
    out_ref[...] = out_ref[...] * alpha_hd + scat

    @pl.when(blk == pl.num_programs(0) - 1)
    def _finalize():
        inv_l = 1.0 / (l_s[...] + 1e-16)                      # matches torch (denom + 1e-16)
        inv_hd = jax.lax.dot_general(inv_l, B, (((0,), (0,)), ((), ())),
                                     preferred_element_type=jnp.float32)
        out_ref[...] = out_ref[...] * inv_hd


def _pad_head_cols(w, b, num_heads, d, d_pad):
    """Zero-pad each head's D columns to d_pad (head-major column layout preserved)."""
    din = w.shape[0]
    w3 = jnp.pad(w.reshape(din, num_heads, d), ((0, 0), (0, 0), (0, d_pad - d)))
    b3 = jnp.pad(b.reshape(1, num_heads, d), ((0, 0), (0, 0), (0, d_pad - d)))
    return w3.reshape(din, num_heads * d_pad), b3.reshape(1, num_heads * d_pad)


def graphormer_sparse_attention(x, edge_attr, edge_index, params, *,
                                num_heads, out_dim, edge_block=256):
    """Returns (h_out [N, H, D], e_out=None), matching the PyTorch forward."""
    N, in_dim = x.shape
    E = edge_attr.shape[0]
    H, D = num_heads, out_dim
    f32 = jnp.float32

    # Lane-dense padding: per-head dim -> Dp with H*Dp % 128 == 0; nodes -> multiple of 128.
    lane = 128
    d_pad = _round_up(D, lane // math.gcd(H, lane))
    hdp = H * d_pad
    n_pad = _round_up(N, lane)

    # Edge tile (multiple of 8) derived from an explicit VMEM budget.
    te = _round_up(min(edge_block, _round_up(E, 8)), 8)
    resident = n_pad * 3 * hdp * 2 + n_pad * hdp * 4 + 2 * H * n_pad * 4

    def _stream(t):  # double-buffered per-step DMA footprint (one-hots bf16 + bias f32)
        return 2 * t * (2 * n_pad * 2 + H * 4)

    budget = 48 * 1024 * 1024
    while te > 8 and resident + _stream(te) > budget:
        te = max(8, _round_up(te // 2, 8))
    e_pad = _round_up(E, te)
    vmem_limit = int(min(budget, max(16 * 1024 * 1024, 2 * (resident + _stream(te)))))

    # Fused, per-head zero-padded Q|K|V projection (bf16 output feeds the bf16 gathers).
    wq, bq = _pad_head_cols(params["wq"], params["bq"], H, D, d_pad)
    wk, bk = _pad_head_cols(params["wk"], params["bk"], H, D, d_pad)
    wv, bv = _pad_head_cols(params["wv"], params["bv"], H, D, d_pad)
    w_qkv = jnp.concatenate([wq, wk, wv], axis=1)             # [Din, 3*HDp]
    b_qkv = jnp.concatenate([bq, bk, bv], axis=1)             # [1, 3*HDp]
    x_pad = jnp.pad(x.astype(f32), ((0, n_pad - N), (0, 0)))
    qkv = _pallas_linear(x_pad, w_qkv, b_qkv, jnp.bfloat16)   # [Np, 3*HDp]
    q_h = qkv[:, :hdp]
    kv_h = qkv[:, hdp:]

    # Edge-bias projection hoisted out of the streaming loop (full f32 precision).
    ea_pad = jnp.pad(edge_attr.astype(f32), ((0, e_pad - E), (0, 0)))
    eb = _pallas_linear(ea_pad, params["we"], params["be"], f32)   # [Ep, H]

    # bf16 one-hot gather/scatter operands; padded edge rows are all-zero -> inert.
    # TODO(synk): replace the O(E*N) one-hots with scalar-prefetched edge-index gathers
    # (PrefetchScalarGridSpec num_scalar_prefetch) to make the kernel fully sparse.
    src_oh = jnp.pad(jax.nn.one_hot(edge_index[0], n_pad, dtype=jnp.bfloat16),
                     ((0, e_pad - E), (0, 0)))
    dst_oh = jnp.pad(jax.nn.one_hot(edge_index[1], n_pad, dtype=jnp.bfloat16),
                     ((0, e_pad - E), (0, 0)))

    kernel = functools.partial(
        _graphormer_attn_kernel,
        num_heads=H, d_pad=d_pad,
        inv_sqrt_d=1.0 / math.sqrt(D), neg_big=-(2.0 ** 100),   # bf16-exact "-inf"
    )

    wv_out = pl.pallas_call(
        kernel,
        out_shape=jax.ShapeDtypeStruct((n_pad, hdp), f32),
        grid_spec=pltpu.PrefetchScalarGridSpec(
            num_scalar_prefetch=0,
            grid=(e_pad // te,),
            in_specs=[
                pl.BlockSpec((n_pad, hdp), lambda i: (0, 0)),        # Q   (bf16, resident)
                pl.BlockSpec((n_pad, 2 * hdp), lambda i: (0, 0)),    # K|V (bf16, resident)
                pl.BlockSpec((te, H), lambda i: (i, 0)),             # edge-bias block (f32)
                pl.BlockSpec((te, n_pad), lambda i: (i, 0)),         # src one-hot block
                pl.BlockSpec((te, n_pad), lambda i: (i, 0)),         # dst one-hot block
            ],
            out_specs=pl.BlockSpec((n_pad, hdp), lambda i: (0, 0)),  # resident accumulator
            scratch_shapes=[
                pltpu.VMEM((H, n_pad), f32),     # running segment max m (head-major)
                pltpu.VMEM((H, n_pad), f32),     # running segment sum l (head-major)
            ],
        ),
        compiler_params=pltpu.CompilerParams(
            # Edge axis reduces into shared per-node state -> "arbitrary".
            # TODO(synk): add a "parallel" dst-tile / head-group axis for v7x's 2nd TensorCore.
            dimension_semantics=("arbitrary",),
            vmem_limit_bytes=vmem_limit,
        ),
    )(q_h, kv_h, eb, src_oh, dst_oh)

    h_out = wv_out[:N].reshape(N, H, d_pad)[:, :, :D]
    return h_out, None


def init_params(key, in_dim, out_dim, num_heads):
    """Deterministic xavier-normal weights / uniform biases (torch-style, stored [in, out])."""
    HD = out_dim * num_heads
    ks = jax.random.split(key, 8)

    def xavier(k, fan_in, fan_out):
        std = math.sqrt(2.0 / (fan_in + fan_out))
        return std * jax.random.normal(k, (fan_in, fan_out), dtype=jnp.float32)

    def bias(k, fan_in, fan_out):
        bound = 1.0 / math.sqrt(fan_in)
        return jax.random.uniform(k, (1, fan_out), dtype=jnp.float32, minval=-bound, maxval=bound)

    return {
        "wq": xavier(ks[0], in_dim, HD), "bq": bias(ks[1], in_dim, HD),
        "wk": xavier(ks[2], in_dim, HD), "bk": bias(ks[3], in_dim, HD),
        "wv": xavier(ks[4], in_dim, HD), "bv": bias(ks[5], in_dim, HD),
        "we": xavier(ks[6], in_dim, num_heads), "be": bias(ks[7], in_dim, num_heads),
    }


def reference_forward(x, edge_attr, edge_index, params, *, num_heads, out_dim):
    """Pure-JAX f32 reference mirroring the PyTorch module (correctness check)."""
    N = x.shape[0]
    src, dst = edge_index[0], edge_index[1]
    Qh = (x @ params["wq"] + params["bq"]).reshape(N, num_heads, out_dim)
    Kh = (x @ params["wk"] + params["bk"]).reshape(N, num_heads, out_dim)
    Vh = (x @ params["wv"] + params["bv"]).reshape(N, num_heads, out_dim)
    Eb = (edge_attr @ params["we"] + params["be"]).reshape(-1, num_heads, 1)

    score = (Kh[src] * Qh[dst] / np.sqrt(out_dim)).sum(-1, keepdims=True) + Eb   # [E, H, 1]
    smax = jax.ops.segment_max(score, dst, num_segments=N)
    ex = jnp.exp(score - smax[dst])
    denom = jax.ops.segment_sum(ex, dst, num_segments=N)[dst] + 1e-16
    attn = ex / denom
    msg = Vh[src] * attn
    wV = jax.ops.segment_sum(msg, dst, num_segments=N)
    return wV


if __name__ == "__main__":
    # Small synthetic graph: 64 nodes (last 8 receive no edges -> isolated-node path),
    # 200 edges (not a multiple of the tile -> padding path), in_dim=32, 4 heads x 16 dims,
    # edge tile 64 -> 4-step streaming grid; N and H*D are padded up to 128 internally.
    N, E_EDGES, IN_DIM, OUT_DIM, NUM_HEADS = 64, 200, 32, 16, 4

    root = jax.random.PRNGKey(0)
    k_x, k_ea, k_src, k_dst, k_par = jax.random.split(root, 5)

    x = jax.random.normal(k_x, (N, IN_DIM), dtype=jnp.float32)
    edge_attr = jax.random.normal(k_ea, (E_EDGES, IN_DIM), dtype=jnp.float32)
    edge_index = jnp.stack(
        [
            jax.random.randint(k_src, (E_EDGES,), 0, N),
            jax.random.randint(k_dst, (E_EDGES,), 0, N - 8),   # nodes N-8..N-1 isolated
        ],
        axis=0,
    )  # [2, E]

    params = init_params(k_par, IN_DIM, OUT_DIM, NUM_HEADS)

    h_out, e_out = graphormer_sparse_attention(
        x, edge_attr, edge_index, params,
        num_heads=NUM_HEADS, out_dim=OUT_DIM, edge_block=64,
    )
    h_out = jax.block_until_ready(h_out)

    ref = reference_forward(
        x, edge_attr, edge_index, params, num_heads=NUM_HEADS, out_dim=OUT_DIM
    )
    # bf16 gather inputs (per the perf review) -> tolerance at bf16 level; p/l/acc stay f32.
    np.testing.assert_allclose(np.asarray(h_out), np.asarray(ref), rtol=5e-2, atol=2.5e-2)
    assert not np.isnan(np.asarray(h_out)).any()
    assert e_out is None
    print("KERNEL_OK")
</pallas_src>

<mosaic_0001>
module attributes {stable_mosaic.version = 11 : i64} {
  func.func @_linear_kernel(%arg0: i32, %arg1: memref<128x32xf32, #tpu.memory_space<vmem>>, %arg2: memref<32x384xf32, #tpu.memory_space<vmem>>, %arg3: memref<1x384xf32, #tpu.memory_space<vmem>>, %arg4: memref<128x384xbf16, #tpu.memory_space<vmem>>) attributes {dimension_semantics = [#tpu.dimension_semantics<arbitrary>], iteration_bounds = array<i64: 1>, scalar_prefetch = 0 : i64, scratch_operands = 0 : i64, tpu.core_type = #tpu.core_type<tc>, window_params = [{pipeline_mode = #tpu.pipeline_mode<synchronous>, transform_indices = @transform_0, window_bounds = array<i64: 128, 32>}, {pipeline_mode = #tpu.pipeline_mode<synchronous>, transform_indices = @transform_1, window_bounds = array<i64: 32, 384>}, {pipeline_mode = #tpu.pipeline_mode<synchronous>, transform_indices = @transform_2, window_bounds = array<i64: 1, 384>}, {pipeline_mode = #tpu.pipeline_mode<synchronous>, transform_indices = @transform_3, window_bounds = array<i64: 128, 384>}]} {
    %c0 = arith.constant 0 : index
    %c0_0 = arith.constant 0 : index
    %0 = vector.load %arg1[%c0, %c0_0] : memref<128x32xf32, #tpu.memory_space<vmem>>, vector<128x32xf32>
    %c0_1 = arith.constant 0 : index
    %c0_2 = arith.constant 0 : index
    %1 = vector.load %arg2[%c0_1, %c0_2] : memref<32x384xf32, #tpu.memory_space<vmem>>, vector<32x384xf32>
    %cst = arith.constant dense<0.000000e+00> : vector<128x384xf32>
    %2 = tpu.matmul %0, %1, %cst {dimension_numbers = #tpu.dot_dimension_numbers<[1], [0], [0], [1], [0, 0, 1, 1], [], []>} : vector<128x32xf32>, vector<32x384xf32>, vector<128x384xf32> -> vector<128x384xf32>
    %c0_3 = arith.constant 0 : index
    %c0_4 = arith.constant 0 : index
    %3 = vector.load %arg3[%c0_3, %c0_4] : memref<1x384xf32, #tpu.memory_space<vmem>>, vector<1x384xf32>
    %4 = vector.broadcast %3 : vector<1x384xf32> to vector<128x384xf32>
    %5 = arith.addf %2, %4 : vector<128x384xf32>
    %6 = arith.truncf %5 : vector<128x384xf32> to vector<128x384xbf16>
    %c0_5 = arith.constant 0 : index
    %c0_6 = arith.constant 0 : index
    %7 = vector.load %arg4[%c0_5, %c0_6] : memref<128x384xbf16, #tpu.memory_space<vmem>>, vector<128x384xbf16>
    tpu.vector_store %arg4[%c0_5, %c0_6], %6 {strides = array<i32>} : memref<128x384xbf16, #tpu.memory_space<vmem>>, vector<128x384xbf16>,
    return
  }
  func.func @transform_0(%arg0: i32) -> (i32, i32) {
    %c0_i32 = arith.constant 0 : i32
    %c0_i32_0 = arith.constant 0 : i32
    %c0_i32_1 = arith.constant 0 : i32
    return %c0_i32, %c0_i32_0 : i32, i32
  }
  func.func @transform_1(%arg0: i32) -> (i32, i32) {
    %c0_i32 = arith.constant 0 : i32
    %c0_i32_0 = arith.constant 0 : i32
    %c0_i32_1 = arith.constant 0 : i32
    return %c0_i32, %c0_i32_0 : i32, i32
  }
  func.func @transform_2(%arg0: i32) -> (i32, i32) {
    %c0_i32 = arith.constant 0 : i32
    %c0_i32_0 = arith.constant 0 : i32
    %c0_i32_1 = arith.constant 0 : i32
    return %c0_i32, %c0_i32_0 : i32, i32
  }
  func.func @transform_3(%arg0: i32) -> (i32, i32) {
    %c0_i32 = arith.constant 0 : i32
    %c0_i32_0 = arith.constant 0 : i32
    %c0_i32_1 = arith.constant 0 : i32
    return %c0_i32, %c0_i32_0 : i32, i32
  }
}

</mosaic_0001>

<bundles_post_ra>
// kernel: tpu_custom_call.1
= control target key start
LH: loop header
LB: loop body
LE: loop exit
PB: predicated region body
PF: predicated region fallthrough
CT: control target
= control target key end

     0   :  { %vm60_vm0 = vcmask 261120   ;;  %v805_v11 = vmov 0.0   ;;  %s1025_s0 = inlined_call_operand.vmem [shape: f32[128,32], index: 0, kind: input, shape index: {}]   ;;  %s1026_s1 = inlined_call_operand.vmem [shape: f32[32,384], index: 1, kind: input, shape index: {}]   ;;  %s1027_s2 = inlined_call_operand.vmem [shape: f32[1,384], index: 2, kind: input, shape index: {}]   ;;  %s1028_s3 = inlined_call_operand.hbm [shape: bf16[128,384], index: 3, kind: output, shape index: {}]  }
   0x1   :  { %v41_v0 = vld [vmem:[%s1026_s1 + $0x50] sm:$0xff]  ;;  %v40_v1 = vld [vmem:[%s1026_s1 + $0x48] sm:$0xff]  ;;  %v38_v2 = vld [vmem:[%s1026_s1 + $0x38] sm:$0xff]  ;;  %173 = vmatprep.mubr.f32.mxu0 %v805_v11  ;;  %245 = vmatprep.mubr.f32.mxu1 %v805_v11 }
   0x2   :  { %133 = vmatprep.subr.mxu0 %v41_v0  ;;  %771 = vmatprep.subr.mxu1 %v41_v0  ;;  %v37_v3 = vld [vmem:[%s1026_s1 + $0x30] sm:$0xff]  ;;  %v35_v4 = vld [vmem:[%s1026_s1 + $0x20] sm:$0xff]  ;;  %v34_v5 = vld [vmem:[%s1026_s1 + $0x18] sm:$0xff] }
   0x3   :  { %134 = vmatpush1.msra.mxu0 %v40_v1  ;;  %775 = vmatpush1.msra.mxu1 %v40_v1  ;;  %v32_v6 = vld [vmem:[%s1026_s1 + $0x8] sm:$0xff]  ;;  %v31_v7 = vld [vmem:[%s1026_s1] sm:$0xff]  ;;  %v42_v10 = vld [vmem:[%s1026_s1 + $0x58] sm:$0xff] }
   0x4   :  { %135 = vmatprep.subr.mxu0 %v38_v2  ;;  %772 = vmatprep.subr.mxu1 %v38_v2  ;;  %v15_v8 = vld [vmem:[%s1025_s0] sm:$0xff] }
   0x5   :  { %136 = vmatpush1.msra.mxu0 %v37_v3  ;;  %776 = vmatpush1.msra.mxu1 %v37_v3  ;;  %v859_v9 = vld [vmem:[%s1025_s0 + $0x60] sm:$0xff] }
   0x6   :  { %137 = vmatprep.subr.mxu0 %v35_v4  ;;  %773 = vmatprep.subr.mxu1 %v35_v4 }
   0x7   :  { %138 = vmatpush1.msra.mxu0 %v34_v5  ;;  %777 = vmatpush1.msra.mxu1 %v34_v5 }
   0x8   :  { %139 = vmatprep.subr.mxu0 %v32_v6  ;;  %774 = vmatprep.subr.mxu1 %v32_v6 }
   0x9   :  { %140 = vmatpush1.msra.mxu0 %v31_v7  ;;  %778 = vmatpush1.msra.mxu1 %v31_v7 }
   0xa   :  { %8 = vsyncpa [#allocation3], 0  ;;  %623 = vmatmul.mubr.msk.f32.vlgmr.msra.gmra.mxu0 %vm60_vm0, %v15_v8  ;;  %635 = vmatmul.mubr.msk.f32.vlgmr.msra.gmra.mxu1 %vm60_vm0, %v859_v9  ;;  %v39_v12 = vld [vmem:[%s1026_s1 + $0x40] sm:$0xff]  ;;  %v16_v13 = vld [vmem:[%s1025_s0 + $0x8] sm:$0xff]  ;;  %v45_v29 = vlaneseq }
   0xb   :  { %739 = vmatprep.subr.mxu1 %v42_v10  ;;  %179 = vmatprep.mubr.f32.mxu0 %v805_v11  ;;  %v28_v14 = vld [vmem:[%s1025_s0 + $0x68] sm:$0xff]  ;;  %v17_v16 = vld [vmem:[%s1025_s0 + $0x10] sm:$0xff]  ;;  %v18_v19 = vld [vmem:[%s1025_s0 + $0x18] sm:$0xff] }
   0xc   :  { %740 = vmatpush3.msra.mxu1 %v42_v10  ;;  %251 = vmatprep.mubr.f32.mxu1 %v805_v11  ;;  %v36_v15 = vld [vmem:[%s1026_s1 + $0x28] sm:$0xff]  ;;  %v29_v17 = vld [vmem:[%s1025_s0 + $0x70] sm:$0xff]  ;;  %v30_v20 = vld [vmem:[%s1025_s0 + $0x78] sm:$0xff]  ;;  %v46_v30 = vshrl.u32 %v45_v29, 7 }
   0xd   :  { %741 = vmatprep.subr.mxu1 %v39_v12  ;;  %v33_v18 = vld [vmem:[%s1026_s1 + $0x10] sm:$0xff]  ;;  %v19_v21 = vld [vmem:[%s1025_s0 + $0x20] sm:$0xff]  ;;  %v20_v22 = vld [vmem:[%s1025_s0 + $0x28] sm:$0xff] }
   0xe   :  { %624 = vmatmul.mubr.msk.f32.gmra.mxu0 %vm60_vm0, %v16_v13  ;;  %636 = vmatmul.mubr.msk.f32.gmra.mxu1 %vm60_vm0, %v28_v14  ;;  %v21_v23 = vld [vmem:[%s1025_s0 + $0x30] sm:$0xff]  ;;  %v22_v24 = vld [vmem:[%s1025_s0 + $0x38] sm:$0xff]  ;;  %v23_v25 = vld [vmem:[%s1025_s0 + $0x40] sm:$0xff]  ;;  %v47_v31 = vsub.s32 0, %v46_v30  ;;  %v51_v32 = vsub.s32 1, %v46_v30  ;;  %v55_v58 = vsub.s32 2, %v46_v30 }
   0xf   :  { %742 = vmatpush3.msra.mxu1 %v39_v12  ;;  %185 = vmatprep.mubr.f32.mxu0 %v805_v11  ;;  %v24_v26 = vld [vmem:[%s1025_s0 + $0x48] sm:$0xff]  ;;  %v25_v27 = vld [vmem:[%s1025_s0 + $0x50] sm:$0xff]  ;;  %v26_v28 = vld [vmem:[%s1025_s0 + $0x58] sm:$0xff] }
  0x10   :  { %257 = vmatprep.mubr.f32.mxu1 %v805_v11  ;;  %743 = vmatprep.subr.mxu1 %v36_v15  ;;  %v43_v33 = vld [vmem:[%s1027_s2] sm:$0x7]  ;;  %s806_s2 = smov [#allocation2]  }
  0x11   :  { %744 = vmatpush3.msra.mxu1 %v36_v15  ;;  %v968_v34 = vrot.slane %v43_v33, %v47_v31  ;;  %v970_v35 = vrot.slane %v43_v33, %v51_v32  ;;  %v984_v5 = vrot.slane %v43_v33, %v55_v58  ;;  %s612_s14 = sshll.u32 %s806_s2, 4  ;;  %s613_s14 = int_to_ptr.vmem [resolvable:$true] %s612_s14 }
  0x12   :  { %625 = vmatmul.mubr.msk.f32.gmra.mxu0 %vm60_vm0, %v17_v16  ;;  %637 = vmatmul.mubr.msk.f32.gmra.mxu1 %vm60_vm0, %v29_v17  ;;  %s783_s15 = scalar_lea.vmem %s613_s14, 3072  ;;  %p788_p1 = scmp.lt.s32.totalorder %s613_s14, %s613_s14 }
  0x13   :  { %191 = vmatprep.mubr.f32.mxu0 %v805_v11  ;;  %263 = vmatprep.mubr.f32.mxu1 %v805_v11  ;;  %p784_p0 = scmp.ne.s32.totalorder %s613_s14, %s783_s15  ;;  %p789_p2 = scmp.lt.s32.totalorder %s783_s15, %s783_s15 }
  0x14   :  { %745 = vmatprep.subr.mxu1 %v33_v18 }
  0x15   :  { %746 = vmatpush3.msra.mxu1 %v33_v18  ;;  %p790_p3 = por %p789_p2, %p788_p1 }
  0x16   :  { %626 = vmatmul.mubr.msk.f32.gmra.mxu0 %vm60_vm0, %v18_v19  ;;  %638 = vmatmul.mubr.msk.f32.gmra.mxu1 %vm60_vm0, %v30_v20 }
  0x17   :  { %197 = vmatprep.mubr.f32.mxu0 %v805_v11  ;;  %747 = vmatprep.mubr.msk.f32.mxu1 %vm60_vm0, %v15_v8  ;;  %p791_p4 = pnand %p790_p3, %p784_p0 }
  0x1a   :  { %627 = vmatmul.mubr.msk.f32.gmra.mxu0 %vm60_vm0, %v19_v21  ;;  %748 = vmatmul.mubr.msk.f32.vlgmr.msra.gmra.mxu1 %vm60_vm0, %v16_v13 }
  0x1b   :  { %203 = vmatprep.mubr.f32.mxu0 %v805_v11  ;;  %750 = vmatprep.mubr.msk.f32.mxu1 %vm60_vm0, %v17_v16 }
  0x1e   :  { %628 = vmatmul.mubr.msk.f32.gmra.mxu0 %vm60_vm0, %v20_v22  ;;  %751 = vmatmul.mubr.msk.f32.gmra.mxu1 %vm60_vm0, %v18_v19 }
  0x1f   :  { %209 = vmatprep.mubr.f32.mxu0 %v805_v11  ;;  %753 = vmatprep.mubr.msk.f32.mxu1 %vm60_vm0, %v19_v21 }
  0x22   :  { %629 = vmatmul.mubr.msk.f32.gmra.mxu0 %vm60_vm0, %v21_v23  ;;  %754 = vmatmul.mubr.msk.f32.gmra.mxu1 %vm60_vm0, %v20_v22 }
  0x23   :  { %215 = vmatprep.mubr.f32.mxu0 %v805_v11  ;;  %756 = vmatprep.mubr.msk.f32.mxu1 %vm60_vm0, %v21_v23 }
  0x26   :  { %630 = vmatmul.mubr.msk.f32.gmra.mxu0 %vm60_vm0, %v22_v24  ;;  %757 = vmatmul.mubr.msk.f32.gmra.mxu1 %vm60_vm0, %v22_v24 }
  0x27   :  { %221 = vmatprep.mubr.f32.mxu0 %v805_v11  ;;  %759 = vmatprep.mubr.msk.f32.mxu1 %vm60_vm0, %v23_v25 }
  0x2a   :  { %631 = vmatmul.mubr.msk.f32.gmra.mxu0 %vm60_vm0, %v23_v25  ;;  %760 = vmatmul.mubr.msk.f32.gmra.mxu1 %vm60_vm0, %v24_v26 }
  0x2b   :  { %227 = vmatprep.mubr.f32.mxu0 %v805_v11  ;;  %762 = vmatprep.mubr.msk.f32.mxu1 %vm60_vm0, %v25_v27 }
  0x2e   :  { %632 = vmatmul.mubr.msk.f32.gmra.mxu0 %vm60_vm0, %v24_v26  ;;  %763 = vmatmul.mubr.msk.f32.gmra.mxu1 %vm60_vm0, %v26_v28 }
  0x2f   :  { %233 = vmatprep.mubr.f32.mxu0 %v805_v11  ;;  %765 = vmatprep.mubr.msk.f32.mxu1 %vm60_vm0, %v859_v9 }
  0x32   :  { %633 = vmatmul.mubr.msk.f32.gmra.mxu0 %vm60_vm0, %v25_v27  ;;  %766 = vmatmul.mubr.msk.f32.gmra.mxu1 %vm60_vm0, %v28_v14 }
  0x33   :  { %239 = vmatprep.mubr.f32.mxu0 %v805_v11  ;;  %768 = vmatprep.mubr.msk.f32.mxu1 %vm60_vm0, %v29_v17 }
  0x36   :  { %634 = vmatmul.mubr.msk.f32.gmra.mxu0 %vm60_vm0, %v26_v28  ;;  %769 = vmatmul.mubr.msk.f32.gmra.mxu1 %vm60_vm0, %v30_v20 }
  0xca   :  { %v175_v36 = vpop.f32.mrf.mxu0  ;;  %v247_v37 = vpop.f32.mrf.mxu1 }
  0xcb   :  { %v176_v40 = vadd.f32 %v175_v36, %v968_v34  ;;  %v248_v41 = vadd.f32 %v247_v37, %v968_v34 }
  0xcc   :  { %v177_v38 = vpop.f32.mrf.mxu0  ;;  %v249_v39 = vpop.f32.mrf.mxu1 }
  0xcd   :  { %v178_v42 = vadd.f32 %v177_v38, %v970_v35  ;;  %v250_v43 = vadd.f32 %v249_v39, %v970_v35 }
  0xce   :  { %v181_v44 = vpop.f32.mrf.mxu0  ;;  %v253_v45 = vpop.f32.mrf.mxu1 }
  0xcf   :  { %v687_v46 = vpack.c.bf16 %v178_v42, %v176_v40  ;;  %v711_v47 = vpack.c.bf16 %v250_v43, %v248_v41  ;;  %v182_v50 = vadd.f32 %v181_v44, %v968_v34  ;;  %v254_v51 = vadd.f32 %v253_v45, %v968_v34 }
  0xd0   :  { %v183_v48 = vpop.f32.mrf.mxu0  ;;  %v255_v49 = vpop.f32.mrf.mxu1 }
  0xd1   :  { %575 = vst [vmem:[#allocation2] sm:$0xff] %v687_v46  ;;  %599 = vst [vmem:[#allocation2 + $0x90] sm:$0xff] %v711_v47  ;;  %v184_v52 = vadd.f32 %v183_v48, %v970_v35  ;;  %v256_v53 = vadd.f32 %v255_v49, %v970_v35 }
  0xd2   :  { %v187_v54 = vpop.f32.mrf.mxu0  ;;  %v259_v55 = vpop.f32.mrf.mxu1 }
  0xd3   :  { %v689_v56 = vpack.c.bf16 %v184_v52, %v182_v50  ;;  %v713_v57 = vpack.c.bf16 %v256_v53, %v254_v51  ;;  %v188_v61 = vadd.f32 %v187_v54, %v968_v34  ;;  %v260_v62 = vadd.f32 %v259_v55, %v968_v34 }
  0xd4   :  { %v189_v59 = vpop.f32.mrf.mxu0  ;;  %v261_v60 = vpop.f32.mrf.mxu1 }
  0xd5   :  { %577 = vst [vmem:[#allocation2 + $0xc] sm:$0xff] %v689_v56  ;;  %601 = vst [vmem:[#allocation2 + $0x9c] sm:$0xff] %v713_v57  ;;  %v190_v63 = vadd.f32 %v189_v59, %v970_v35  ;;  %v262_v0 = vadd.f32 %v261_v60, %v970_v35 }
  0xd6   :  { %v193_v1 = vpop.f32.mrf.mxu0  ;;  %v265_v2 = vpop.f32.mrf.mxu1 }
  0xd7   :  { %v691_v3 = vpack.c.bf16 %v190_v63, %v188_v61  ;;  %v715_v4 = vpack.c.bf16 %v262_v0, %v260_v62  ;;  %v194_v8 = vadd.f32 %v193_v1, %v968_v34  ;;  %v266_v9 = vadd.f32 %v265_v2, %v968_v34 }
  0xd8   :  { %v195_v6 = vpop.f32.mrf.mxu0  ;;  %v267_v7 = vpop.f32.mrf.mxu1 }
  0xd9   :  { %579 = vst [vmem:[#allocation2 + $0x18] sm:$0xff] %v691_v3  ;;  %603 = vst [vmem:[#allocation2 + $0xa8] sm:$0xff] %v715_v4  ;;  %v196_v10 = vadd.f32 %v195_v6, %v970_v35  ;;  %v268_v11 = vadd.f32 %v267_v7, %v970_v35 }
  0xda   :  { %v199_v12 = vpop.f32.mrf.mxu0  ;;  %v749_v13 = vpop.f32.mrf.mxu1 }
  0xdb   :  { %v693_v14 = vpack.c.bf16 %v196_v10, %v194_v8  ;;  %v717_v15 = vpack.c.bf16 %v268_v11, %v266_v9  ;;  %v342_v16 = vadd.f32 %v749_v13, %v984_v5  ;;  %v200_v19 = vadd.f32 %v199_v12, %v968_v34 }
  0xdc   :  { %v201_v17 = vpop.f32.mrf.mxu0  ;;  %v336_v18 = vpop.f32.mrf.mxu1 }
  0xdd   :  { %581 = vst [vmem:[#allocation2 + $0x24] sm:$0xff] %v693_v14  ;;  %605 = vst [vmem:[#allocation2 + $0xb4] sm:$0xff] %v717_v15  ;;  %v690_v20 = vpack.c.bf16 %v342_v16, %v342_v16  ;;  %v202_v21 = vadd.f32 %v201_v17, %v970_v35  ;;  %v337_v22 = vadd.f32 %v336_v18, %v984_v5 }
  0xde   :  { %v205_v23 = vpop.f32.mrf.mxu0  ;;  %v752_v24 = vpop.f32.mrf.mxu1 }
  0xdf   :  { %578 = vst [vmem:[#allocation2 + $0x14] sm:$0xf] %v690_v20  ;;  %v695_v25 = vpack.c.bf16 %v202_v21, %v200_v19  ;;  %v688_v26 = vpack.c.bf16 %v337_v22, %v337_v22  ;;  %v352_v27 = vadd.f32 %v752_v24, %v984_v5  ;;  %v206_v30 = vadd.f32 %v205_v23, %v968_v34 }
  0xe0   :  { %v207_v28 = vpop.f32.mrf.mxu0  ;;  %v346_v29 = vpop.f32.mrf.mxu1 }
  0xe1   :  { %583 = vst [vmem:[#allocation2 + $0x30] sm:$0xff] %v695_v25  ;;  %576 = vst [vmem:[#allocation2 + $0x8] sm:$0xf] %v688_v26  ;;  %v694_v31 = vpack.c.bf16 %v352_v27, %v352_v27  ;;  %v208_v32 = vadd.f32 %v207_v28, %v970_v35  ;;  %v347_v33 = vadd.f32 %v346_v29, %v984_v5 }
  0xe2   :  { %v211_v36 = vpop.f32.mrf.mxu0  ;;  %v755_v37 = vpop.f32.mrf.mxu1 }
  0xe3   :  { %582 = vst [vmem:[#allocation2 + $0x2c] sm:$0xf] %v694_v31  ;;  %v697_v38 = vpack.c.bf16 %v208_v32, %v206_v30  ;;  %v692_v39 = vpack.c.bf16 %v347_v33, %v347_v33  ;;  %v362_v40 = vadd.f32 %v755_v37, %v984_v5  ;;  %v212_v43 = vadd.f32 %v211_v36, %v968_v34 }
  0xe4   :  { %v213_v41 = vpop.f32.mrf.mxu0  ;;  %v356_v42 = vpop.f32.mrf.mxu1 }
  0xe5   :  { %585 = vst [vmem:[#allocation2 + $0x3c] sm:$0xff] %v697_v38  ;;  %580 = vst [vmem:[#allocation2 + $0x20] sm:$0xf] %v692_v39  ;;  %v698_v44 = vpack.c.bf16 %v362_v40, %v362_v40  ;;  %v214_v45 = vadd.f32 %v213_v41, %v970_v35  ;;  %v357_v46 = vadd.f32 %v356_v42, %v984_v5 }
  0xe6   :  { %v217_v47 = vpop.f32.mrf.mxu0  ;;  %v758_v48 = vpop.f32.mrf.mxu1 }
  0xe7   :  { %586 = vst [vmem:[#allocation2 + $0x44] sm:$0xf] %v698_v44  ;;  %v699_v49 = vpack.c.bf16 %v214_v45, %v212_v43  ;;  %v696_v50 = vpack.c.bf16 %v357_v46, %v357_v46  ;;  %v372_v51 = vadd.f32 %v758_v48, %v984_v5  ;;  %v218_v54 = vadd.f32 %v217_v47, %v968_v34 }
  0xe8   :  { %v219_v52 = vpop.f32.mrf.mxu0  ;;  %v366_v53 = vpop.f32.mrf.mxu1 }
  0xe9   :  { %587 = vst [vmem:[#allocation2 + $0x48] sm:$0xff] %v699_v49  ;;  %584 = vst [vmem:[#allocation2 + $0x38] sm:$0xf] %v696_v50  ;;  %v702_v55 = vpack.c.bf16 %v372_v51, %v372_v51  ;;  %v220_v56 = vadd.f32 %v219_v52, %v970_v35  ;;  %v367_v57 = vadd.f32 %v366_v53, %v984_v5 }
  0xea   :  { %v223_v58 = vpop.f32.mrf.mxu0  ;;  %v761_v59 = vpop.f32.mrf.mxu1 }
  0xeb   :  { %590 = vst [vmem:[#allocation2 + $0x5c] sm:$0xf] %v702_v55  ;;  %v701_v60 = vpack.c.bf16 %v220_v56, %v218_v54  ;;  %v700_v61 = vpack.c.bf16 %v367_v57, %v367_v57  ;;  %v382_v62 = vadd.f32 %v761_v59, %v984_v5  ;;  %v224_v1 = vadd.f32 %v223_v58, %v968_v34 }
  0xec   :  { %v225_v63 = vpop.f32.mrf.mxu0  ;;  %v376_v0 = vpop.f32.mrf.mxu1 }
  0xed   :  { %589 = vst [vmem:[#allocation2 + $0x54] sm:$0xff] %v701_v60  ;;  %588 = vst [vmem:[#allocation2 + $0x50] sm:$0xf] %v700_v61  ;;  %v706_v2 = vpack.c.bf16 %v382_v62, %v382_v62  ;;  %v226_v3 = vadd.f32 %v225_v63, %v970_v35  ;;  %v377_v4 = vadd.f32 %v376_v0, %v984_v5 }
  0xee   :  { %v229_v6 = vpop.f32.mrf.mxu0  ;;  %v764_v7 = vpop.f32.mrf.mxu1 }
  0xef   :  { %594 = vst [vmem:[#allocation2 + $0x74] sm:$0xf] %v706_v2  ;;  %v703_v8 = vpack.c.bf16 %v226_v3, %v224_v1  ;;  %v704_v9 = vpack.c.bf16 %v377_v4, %v377_v4  ;;  %v392_v10 = vadd.f32 %v764_v7, %v984_v5  ;;  %v230_v13 = vadd.f32 %v229_v6, %v968_v34 }
  0xf0   :  { %v231_v11 = vpop.f32.mrf.mxu0  ;;  %v386_v12 = vpop.f32.mrf.mxu1 }
  0xf1   :  { %591 = vst [vmem:[#allocation2 + $0x60] sm:$0xff] %v703_v8  ;;  %592 = vst [vmem:[#allocation2 + $0x68] sm:$0xf] %v704_v9  ;;  %v710_v14 = vpack.c.bf16 %v392_v10, %v392_v10  ;;  %v232_v15 = vadd.f32 %v231_v11, %v970_v35  ;;  %v387_v16 = vadd.f32 %v386_v12, %v984_v5 }
  0xf2   :  { %v235_v17 = vpop.f32.mrf.mxu0  ;;  %v767_v18 = vpop.f32.mrf.mxu1 }
  0xf3   :  { %598 = vst [vmem:[#allocation2 + $0x8c] sm:$0xf] %v710_v14  ;;  %v705_v19 = vpack.c.bf16 %v232_v15, %v230_v13  ;;  %v708_v20 = vpack.c.bf16 %v387_v16, %v387_v16  ;;  %v402_v21 = vadd.f32 %v767_v18, %v984_v5  ;;  %v236_v24 = vadd.f32 %v235_v17, %v968_v34 }
  0xf4   :  { %v237_v22 = vpop.f32.mrf.mxu0  ;;  %v396_v23 = vpop.f32.mrf.mxu1 }
  0xf5   :  { %593 = vst [vmem:[#allocation2 + $0x6c] sm:$0xff] %v705_v19  ;;  %596 = vst [vmem:[#allocation2 + $0x80] sm:$0xf] %v708_v20  ;;  %v714_v25 = vpack.c.bf16 %v402_v21, %v402_v21  ;;  %v238_v26 = vadd.f32 %v237_v22, %v970_v35  ;;  %v397_v27 = vadd.f32 %v396_v23, %v984_v5 }
  0xf6   :  { %v241_v28 = vpop.f32.mrf.mxu0  ;;  %v770_v29 = vpop.f32.mrf.mxu1 }
  0xf7   :  { %602 = vst [vmem:[#allocation2 + $0xa4] sm:$0xf] %v714_v25  ;;  %v707_v30 = vpack.c.bf16 %v238_v26, %v236_v24  ;;  %v712_v31 = vpack.c.bf16 %v397_v27, %v397_v27  ;;  %v412_v32 = vadd.f32 %v770_v29, %v984_v5  ;;  %v242_v37 = vadd.f32 %v241_v28, %v968_v34 }
  0xf8   :  { %v243_v33 = vpop.f32.mrf.mxu0  ;;  %v406_v36 = vpop.f32.mrf.mxu1 }
  0xf9   :  { %595 = vst [vmem:[#allocation2 + $0x78] sm:$0xff] %v707_v30  ;;  %600 = vst [vmem:[#allocation2 + $0x98] sm:$0xf] %v712_v31  ;;  %v718_v38 = vpack.c.bf16 %v412_v32, %v412_v32  ;;  %v244_v39 = vadd.f32 %v243_v33, %v970_v35  ;;  %v407_v40 = vadd.f32 %v406_v36, %v984_v5 }
  0xfb   :  { %606 = vst [vmem:[#allocation2 + $0xbc] sm:$0xf] %v718_v38  ;;  %v709_v41 = vpack.c.bf16 %v244_v39, %v242_v37  ;;  %v716_v42 = vpack.c.bf16 %v407_v40, %v407_v40 }
  0xfd   :  { %597 = vst [vmem:[#allocation2 + $0x84] sm:$0xff] %v709_v41  ;;  %604 = vst [vmem:[#allocation2 + $0xb0] sm:$0xf] %v716_v42 }
  0xfe   :  { %794 = shalt.err (!%p791_p4)
}
  0xff   :  { %s807_s16 = smov 192   ;;  %s808_s17 = smov 12  }
 0x100   :  { %618 = dma.vmem_to_hbm [thread:$0]  %s613_s14, 3072, %s1028_s3, [#allocation3], %s807_s16, %s807_s16, %s808_s17  }
 0x101   :  { %803 = dma.done.wait [#allocation3], 3072  }
 0x102   :  { %804 = vsyncadd [#allocation3], 4294964224 }
 0x103   :  { %622 = vsyncpa [#allocation3], 1 }

</bundles_post_ra>
